<compile_context>
chip_gen: v7x
topology: tpu7x:2x2x1
jax: 0.10.0
libtpu: 0.0.40
codegen_flags: <defaults>
</compile_context>

<pallas_src>
import functools

import jax
import jax.numpy as jnp
from jax.experimental import pallas as pl
from jax.experimental.pallas import tpu as pltpu

ALPHA = 1.0
GAMMA = 2.0  # static; lowered as an explicit square in the kernel (no pow)


def _focal_loss_kernel(logits_ref, targets_ref, out_ref, acc_ref, *,
                       tile_n, n_valid, need_mask):
    # logits_ref:  (tile_n, C) in VMEM (f32 or bf16)
    # targets_ref: (tile_n, 1) int32 in VMEM
    # out_ref:     (1, 1) f32 in SMEM (final scalar)
    # acc_ref:     (tile_n, 1) f32 VMEM scratch (running per-row focal sum)
    i = pl.program_id(0)

    @pl.when(i == 0)
    def _():
        acc_ref[...] = jnp.zeros_like(acc_ref)

    x = logits_ref[...].astype(jnp.float32)              # (tile_n, C)
    t = targets_ref[...]                                  # (tile_n, 1) int32

    # Numerically-stable log-sum-exp per row.
    m = jnp.max(x, axis=-1, keepdims=True)                # (tile_n, 1)
    lse = jnp.log(jnp.sum(jnp.exp(x - m), axis=-1, keepdims=True)) + m

    # Target-class logit via a one-hot lane mask (no per-row dynamic gather).
    col = jax.lax.broadcasted_iota(jnp.int32, x.shape, dimension=1)
    tgt_logit = jnp.sum(jnp.where(col == t, x, 0.0), axis=-1, keepdims=True)

    # Cross entropy (reduction='none'); clamp >= 0 so exp(-ce) <= 1 exactly.
    ce = jnp.maximum(lse - tgt_logit, 0.0)                 # (tile_n, 1)
    pt = jnp.exp(-ce)
    w = 1.0 - pt
    focal = (ALPHA * ce) * (w * w)                         # gamma=2 -> square

    if need_mask:
        # Zero contributions from rows padded up to the tile boundary.
        row = jax.lax.broadcasted_iota(jnp.int32, focal.shape, dimension=0) + i * tile_n
        focal = jnp.where(row < n_valid, focal, 0.0)

    acc_ref[...] += focal                                  # elementwise VPU add

    @pl.when(i == pl.num_programs(0) - 1)
    def _():
        out_ref[0, 0] = jnp.sum(acc_ref[...]) / jnp.float32(n_valid)


def _pick_tile_n(n, c):
    """Rows per tile: lane-padded C, ~4 MiB per logits tile (x2 when buffered)."""
    c_pad = max(((c + 127) // 128) * 128, 128)            # C lane-padded to 128
    budget_rows = (4 * 1024 * 1024) // (c_pad * 4)        # safe under v5e 16MiB scoped VMEM
    n8 = ((n + 7) // 8) * 8
    tile = min(1024, budget_rows, n8)
    return max(8, (tile // 8) * 8)


def focal_loss(logits, targets, *, tile_n=None):
    """logits: (N, C) float32/bfloat16; targets: (N,) integer class indices."""
    n, c = logits.shape
    if tile_n is None:
        tile_n = _pick_tile_n(n, c)
    num_tiles = pl.cdiv(n, tile_n)
    n_pad = num_tiles * tile_n
    if n_pad != n:
        logits = jnp.pad(logits, ((0, n_pad - n), (0, 0)))
        targets = jnp.pad(targets, ((0, n_pad - n),))
    targets_2d = targets.astype(jnp.int32).reshape(n_pad, 1)

    kernel = functools.partial(_focal_loss_kernel, tile_n=tile_n, n_valid=n,
                               need_mask=(n_pad != n))
    out = pl.pallas_call(
        kernel,
        out_shape=jax.ShapeDtypeStruct((1, 1), jnp.float32),
        grid=(num_tiles,),
        in_specs=[
            pl.BlockSpec((tile_n, c), lambda i: (i, 0)),   # logits row tiles (pipelined)
            pl.BlockSpec((tile_n, 1), lambda i: (i, 0)),   # target column tiles
        ],
        out_specs=pl.BlockSpec((1, 1), lambda i: (0, 0), memory_space=pltpu.SMEM),
        scratch_shapes=[pltpu.VMEM((tile_n, 1), jnp.float32)],
        compiler_params=pltpu.CompilerParams(
            dimension_semantics=("arbitrary",)),           # carried accumulator
    )(logits, targets_2d)
    return out[0, 0]


def focal_loss_ref(logits, targets):
    """Pure-JAX reference mirroring the PyTorch module."""
    logp = jax.nn.log_softmax(logits.astype(jnp.float32), axis=-1)
    ce = -jnp.take_along_axis(logp, targets[:, None].astype(jnp.int32), axis=-1)[:, 0]
    pt = jnp.exp(-ce)
    return jnp.mean(ALPHA * (1.0 - pt) ** GAMMA * ce)


if __name__ == "__main__":
    key = jax.random.PRNGKey(0)
    k1, k2, k3, k4 = jax.random.split(key, 4)

    # Small case matching the module's 2-D cross_entropy usage: batch=8, classes=32.
    N, C = 8, 32
    logits = jax.random.normal(k1, (N, C), dtype=jnp.float32)
    targets = jax.random.randint(k2, (N,), 0, C, dtype=jnp.int32)

    loss = focal_loss(logits, targets)
    jax.block_until_ready(loss)
    ref = focal_loss_ref(logits, targets)
    assert jnp.allclose(loss, ref, rtol=1e-5, atol=1e-6), (loss, ref)

    # Multi-tile + padded-rows path (N not a multiple of the tile) to exercise
    # the grid accumulator, row masking and final mean normalization.
    N2, C2 = 200, 40
    logits2 = jax.random.normal(k3, (N2, C2), dtype=jnp.float32)
    targets2 = jax.random.randint(k4, (N2,), 0, C2, dtype=jnp.int32)
    loss2 = focal_loss(logits2, targets2, tile_n=64)
    jax.block_until_ready(loss2)
    ref2 = focal_loss_ref(logits2, targets2)
    assert jnp.allclose(loss2, ref2, rtol=1e-5, atol=1e-5), (loss2, ref2)

    # bf16 logits path (in-kernel f32 upcast; same values fed to the reference).
    logits3 = logits2.astype(jnp.bfloat16)
    loss3 = focal_loss(logits3, targets2, tile_n=64)
    jax.block_until_ready(loss3)
    ref3 = focal_loss_ref(logits3, targets2)
    assert jnp.allclose(loss3, ref3, rtol=1e-5, atol=1e-5), (loss3, ref3)

    print("KERNEL_OK")
</pallas_src>

<mosaic_0001>
module attributes {stable_mosaic.version = 11 : i64} {
  func.func @_focal_loss_kernel(%arg0: i32, %arg1: memref<8x32xf32, #tpu.memory_space<vmem>>, %arg2: memref<8x1xi32, #tpu.memory_space<vmem>>, %arg3: memref<1x1xf32, #tpu.memory_space<smem>>, %arg4: memref<8x1xf32, #tpu.memory_space<vmem>>) attributes {dimension_semantics = [#tpu.dimension_semantics<arbitrary>], iteration_bounds = array<i64: 1>, scalar_prefetch = 0 : i64, scratch_operands = 1 : i64, tpu.core_type = #tpu.core_type<tc>, window_params = [{transform_indices = @transform_0, window_bounds = array<i64: 8, 32>}, {transform_indices = @transform_1, window_bounds = array<i64: 8, 1>}, {transform_indices = @transform_2, window_bounds = array<i64: 1, 1>}]} {
    %c0_i32 = arith.constant 0 : i32
    %0 = arith.cmpi eq, %arg0, %c0_i32 : i32
    %1 = arith.extui %0 : i1 to i32
    %c0_i32_0 = arith.constant 0 : i32
    %2 = arith.cmpi ne, %1, %c0_i32_0 : i32
    scf.if %2 {
      %cst_17 = arith.constant 0.000000e+00 : f32
      %39 = vector.broadcast %cst_17 : f32 to vector<8x1xf32>
      %c0_18 = arith.constant 0 : index
      %c0_19 = arith.constant 0 : index
      %40 = vector.load %arg4[%c0_18, %c0_19] : memref<8x1xf32, #tpu.memory_space<vmem>>, vector<8x1xf32>
      tpu.vector_store %arg4[%c0_18, %c0_19], %39 {strides = array<i32>} : memref<8x1xf32, #tpu.memory_space<vmem>>, vector<8x1xf32>,
    } else {
    }
    %c0 = arith.constant 0 : index
    %c0_1 = arith.constant 0 : index
    %3 = vector.load %arg1[%c0, %c0_1] : memref<8x32xf32, #tpu.memory_space<vmem>>, vector<8x32xf32>
    %c0_2 = arith.constant 0 : index
    %c0_3 = arith.constant 0 : index
    %4 = vector.load %arg2[%c0_2, %c0_3] : memref<8x1xi32, #tpu.memory_space<vmem>>, vector<8x1xi32>
    %cst = arith.constant dense<0xFF800000> : vector<8xf32>
    %5 = vector.multi_reduction <maximumf>, %3, %cst [1] : vector<8x32xf32> to vector<8xf32>
    %6 = vector.shape_cast %5 : vector<8xf32> to vector<8x1xf32>
    %7 = vector.broadcast %6 : vector<8x1xf32> to vector<8x32xf32>
    %8 = arith.subf %3, %7 : vector<8x32xf32>
    %9 = math.exp %8 : vector<8x32xf32>
    %cst_4 = arith.constant dense<0.000000e+00> : vector<8xf32>
    %10 = vector.multi_reduction <add>, %9, %cst_4 [1] : vector<8x32xf32> to vector<8xf32>
    %11 = vector.shape_cast %10 : vector<8xf32> to vector<8x1xf32>
    %12 = math.log %11 : vector<8x1xf32>
    %13 = arith.addf %12, %6 : vector<8x1xf32>
    %14 = tpu.iota {dimensions = array<i32: 1>} : vector<8x32xi32>
    %15 = vector.broadcast %4 : vector<8x1xi32> to vector<8x32xi32>
    %16 = arith.cmpi eq, %14, %15 : vector<8x32xi32>
    %cst_5 = arith.constant 0.000000e+00 : f32
    %17 = vector.broadcast %cst_5 : f32 to vector<8x32xf32>
    %18 = arith.select %16, %3, %17 : vector<8x32xi1>, vector<8x32xf32>
    %cst_6 = arith.constant dense<0.000000e+00> : vector<8xf32>
    %19 = vector.multi_reduction <add>, %18, %cst_6 [1] : vector<8x32xf32> to vector<8xf32>
    %20 = vector.shape_cast %19 : vector<8xf32> to vector<8x1xf32>
    %21 = arith.subf %13, %20 : vector<8x1xf32>
    %cst_7 = arith.constant 0.000000e+00 : f32
    %22 = vector.broadcast %cst_7 : f32 to vector<8x1xf32>
    %23 = arith.maximumf %21, %22 : vector<8x1xf32>
    %cst_8 = arith.constant 0.000000e+00 : f32
    %24 = vector.broadcast %cst_8 : f32 to vector<8x1xf32>
    %25 = arith.subf %24, %23 : vector<8x1xf32>
    %26 = math.exp %25 : vector<8x1xf32>
    %cst_9 = arith.constant 1.000000e+00 : f32
    %27 = vector.broadcast %cst_9 : f32 to vector<8x1xf32>
    %28 = arith.subf %27, %26 : vector<8x1xf32>
    %cst_10 = arith.constant 1.000000e+00 : f32
    %29 = vector.broadcast %cst_10 : f32 to vector<8x1xf32>
    %30 = arith.mulf %29, %23 : vector<8x1xf32>
    %31 = arith.mulf %28, %28 : vector<8x1xf32>
    %32 = arith.mulf %30, %31 : vector<8x1xf32>
    %c0_11 = arith.constant 0 : index
    %c0_12 = arith.constant 0 : index
    %33 = vector.load %arg4[%c0_11, %c0_12] : memref<8x1xf32, #tpu.memory_space<vmem>>, vector<8x1xf32>
    %34 = arith.addf %33, %32 : vector<8x1xf32>
    %c0_13 = arith.constant 0 : index
    %c0_14 = arith.constant 0 : index
    %35 = vector.load %arg4[%c0_13, %c0_14] : memref<8x1xf32, #tpu.memory_space<vmem>>, vector<8x1xf32>
    tpu.vector_store %arg4[%c0_13, %c0_14], %34 {strides = array<i32>} : memref<8x1xf32, #tpu.memory_space<vmem>>, vector<8x1xf32>,
    %c0_i32_15 = arith.constant 0 : i32
    %36 = arith.cmpi eq, %arg0, %c0_i32_15 : i32
    %37 = arith.extui %36 : i1 to i32
    %c0_i32_16 = arith.constant 0 : i32
    %38 = arith.cmpi ne, %37, %c0_i32_16 : i32
    scf.if %38 {
      %c0_17 = arith.constant 0 : index
      %c0_18 = arith.constant 0 : index
      %39 = vector.load %arg4[%c0_17, %c0_18] : memref<8x1xf32, #tpu.memory_space<vmem>>, vector<8x1xf32>
      %40 = vector.shape_cast %39 : vector<8x1xf32> to vector<1x8x1xf32>
      %cst_19 = arith.constant dense<0.000000e+00> : vector<1xf32>
      %41 = vector.multi_reduction <add>, %40, %cst_19 [1, 2] : vector<1x8x1xf32> to vector<1xf32>
      %42 = vector.shape_cast %41 : vector<1xf32> to vector<1x1x1xf32>
      %43 = vector.extract %42[0, 0, 0] : f32 from vector<1x1x1xf32>
      %cst_20 = arith.constant 8.000000e+00 : f32
      %44 = arith.divf %43, %cst_20 : f32
      %c0_21 = arith.constant 0 : index
      %c0_22 = arith.constant 0 : index
      %45 = memref.load %arg3[%c0_21, %c0_22] : memref<1x1xf32, #tpu.memory_space<smem>>
      memref.store %44, %arg3[%c0_21, %c0_22] : memref<1x1xf32, #tpu.memory_space<smem>>
    } else {
    }
    return
  }
  func.func @transform_0(%arg0: i32) -> (i32, i32) {
    %c0_i32 = arith.constant 0 : i32
    %c0_i32_0 = arith.constant 0 : i32
    return %arg0, %c0_i32 : i32, i32
  }
  func.func @transform_1(%arg0: i32) -> (i32, i32) {
    %c0_i32 = arith.constant 0 : i32
    %c0_i32_0 = arith.constant 0 : i32
    return %arg0, %c0_i32 : i32, i32
  }
  func.func @transform_2(%arg0: i32) -> (i32, i32) {
    %c0_i32 = arith.constant 0 : i32
    %c0_i32_0 = arith.constant 0 : i32
    %c0_i32_1 = arith.constant 0 : i32
    return %c0_i32, %c0_i32_0 : i32, i32
  }
}

</mosaic_0001>

<bundles_post_ra>
// kernel: tpu_custom_call.1
= control target key start
LH: loop header
LB: loop body
LE: loop exit
PB: predicated region body
PF: predicated region fallthrough
CT: control target
= control target key end

     0   :  { %vm20_vm0 = vcmask 261120   ;;  %s153_s0 = inlined_call_operand.vmem [shape: f32[8,32], index: 0, kind: input, shape index: {}]   ;;  %s154_s1 = inlined_call_operand.vmem [shape: s32[8,1], index: 1, kind: input, shape index: {}]   ;;  %s155_s2 = inlined_call_operand.hbm [shape: f32[1,1], index: 2, kind: output, shape index: {}]  }
   0x1   :  { %v18_v0 = vld [vmem:[%s153_s0] sm:$0xff] }
   0x2   :  { %7 = vsyncpa [#allocation4], 0  ;;  %v21_v1 = vsel %vm20_vm0, %v18_v0, -inf  ;;  %v111_v2 = vmov 0   ;;  %v19_v3 = vld [vmem:[%s154_s1] sm:$0xff]  ;;  %v33_v7 = vlaneseq  ;;  %vm16_vm2 = vcmask 7168  }
   0x3   :  { %92 = vset.pattern.permute.xlu0 %v111_v2  ;;  %v112_v14 = vmov 0.0   ;;  %s99_s15 = scalar_lea.hbm %s155_s2, 16 }
   0x4   :  { %22 = vmax.xlane.f32.xlu0 %v21_v1  ;;  %v34_v8 = vand.u32 127, %v33_v7  ;;  %17 = vst.msk [vmem:[#allocation2] sm:$0xff] %vm16_vm2, %v112_v14  ;;  %p100_p0 = scmp.ne.s32.totalorder %s155_s2, %s99_s15  ;;  %p103_p1 = scmp.lt.u32.totalorder %s99_s15, %s155_s2 }
   0x6   :  { %p105_p2 = pnand %p103_p1, %p100_p0 }
   0xb   :  { %v51_v27 = vld [vmem:[#allocation2] sm:$0xff] }
  0x1a   :  { %36 = vperm.xlu0 %92, %v19_v3  }
  0x91   :  { %v23_v4 = vpop.xlane.xlu0 %22 }
  0x92   :  { %v24_v5 = vsub.f32 %v18_v0, %v23_v4 }
  0x94   :  { %v25_v6 = vmul.f32 1.442695, %v24_v5 }
  0x96   :  { %93 = vpow2.f32 %v25_v6 }
  0x99   :  { %v37_v9 = vpop.permute.xlu0 %36 }
  0x9a   :  { %vm38_vm1 = vcmp.eq.s32.totalorder %v34_v8, %v37_v9 }
  0x9b   :  { %v39_v11 = vsel %vm38_vm1, %v18_v0, 0.0 }
  0x9c   :  { %v40_v13 = vsel %vm20_vm0, %v39_v11, 0.0 }
  0xa0   :  { %v94_v10 = vpop.eup %93 }
  0xa1   :  { %v27_v12 = vsel %vm20_vm0, %v94_v10, 0.0 }
  0xa2   :  { %28 = vadd.xlane.f32.xlu1 %v27_v12 }
  0xa6   :  { %41 = vadd.xlane.f32.xlu1 %v40_v13 }
 0x12f   :  { %v29_v15 = vpop.xlane.xlu1 %28 }
 0x130   :  { %95 = vlog2.f32 %v29_v15 }
 0x133   :  { %v42_v18 = vpop.xlane.xlu1 %41 }
 0x13a   :  { %v96_v16 = vpop.eup %95 }
 0x13b   :  { %v31_v17 = vmul.f32 0.6931472, %v96_v16 }
 0x13d   :  { %v32_v19 = vadd.f32 %v31_v17, %v23_v4 }
 0x13f   :  { %v43_v20 = vsub.f32 %v32_v19, %v42_v18 }
 0x141   :  { %v44_v21 = vmax.f32 %v43_v20, 0.0 }
 0x143   :  { %v45_v22 = vsub.f32 0.0, %v44_v21 }
 0x145   :  { %v46_v23 = vmul.f32 1.442695, %v45_v22 }
 0x147   :  { %97 = vpow2.f32 %v46_v23 }
 0x151   :  { %v98_v24 = vpop.eup %97 }
 0x152   :  { %v48_v25 = vsub.f32 1.0, %v98_v24 }
 0x154   :  { %v49_v26 = vmul.f32 %v48_v25, %v48_v25 }
 0x156   :  { %v50_v28 = vmul.f32 %v49_v26, %v44_v21 }
 0x158   :  { %v52_v29 = vadd.f32 %v51_v27, %v50_v28 }
 0x15a   :  { %54 = vst.msk [vmem:[#allocation2] sm:$0xff] %vm16_vm2, %v52_v29 }
 0x161   :  { %v58_v30 = vld [vmem:[#allocation2] sm:$0xff] }
 0x162   :  { %v59_v31 = vsel %vm16_vm2, %v58_v30, 0.0 }
 0x163   :  { %60 = vadd.xlane.f32.xlu1 %v59_v31 }
 0x1f0   :  { %v61_v32 = vpop.xlane.xlu1 %60 }
 0x1f1   :  { %v62_v33 = vrot.slane %v61_v32, 4 }
 0x1f3   :  { %v63_v34 = vadd.f32 %v62_v33, %v61_v32 }
 0x1f5   :  { %v64_v35 = vrot.slane %v63_v34, 2 }
 0x1f7   :  { %v65_v36 = vadd.f32 %v64_v35, %v63_v34 }
 0x1f9   :  { %v66_v37 = vrot.slane %v65_v36, 1 }
 0x1fb   :  { %v67_v38 = vadd.f32 %v66_v37, %v65_v36 }
 0x1fd   :  { %87 = vpush %v67_v38 }
 0x22e   :  { %s88_s0 = spop %87 }
 0x22f   :  { %s71_s1 = smul.f32 0.125, %s88_s0 }
 0x231   :  { %73 = sst [smem:[#allocation3]] %s71_s1 }
 0x232   :  { %108 = shalt.err (!%p105_p2)
}
 0x233   :  { %s113_s20 = smov [#allocation3]  }
 0x234   :  { %81 = dma.smem_to_hbm %s113_s20, 16, %s155_s2, [#allocation4]  }
 0x235   :  { %109 = dma.done.wait [#allocation4], 16  }
 0x236   :  { %110 = vsyncadd [#allocation4], 4294967280 }
 0x237   :  { %85 = sfence }
 0x238   :  { %86 = vsyncpa [#allocation4], 1 }

</bundles_post_ra>
